<compile_context>
chip_gen: v7x
topology: tpu7x:2x2x1
jax: 0.10.0
libtpu: 0.0.40
codegen_flags: <defaults>
</compile_context>

<pallas_src>
import jax
import jax.numpy as jnp
from jax.experimental import pallas as pl
from jax.experimental.pallas import tpu as pltpu


def _round_up(v, m):
    return (v + m - 1) // m * m


# --------------------------- kernel 1: z branch -------------------------------

def zbranch_filters(z_patches, wz_f, bz, *, tile_o=None):
    """Fused conv_cls1|conv_r1 as one batch-flattened, O-tiled matmul.

    z_patches: (M=N*9, 9C) im2col of the 9 valid exemplar output positions
               (tap-major / channel-minor columns).
    wz_f:      (9C, O) fused weight, same column ordering. O = 6*A*C.
    bz:        (O,) fused bias.
    Returns (M, O) f32: row = (batch, z-conv output position), col = channel.
    """
    M, K = z_patches.shape
    O = wz_f.shape[1]
    if tile_o is None:
        # production (O >= 4096): 1024-wide bf16 weight tiles keep the
        # double-buffered block well inside v7x's 64 MiB VMEM; toy sizes use
        # 256 so the O grid axis is still exercised (and v7x gets >1 block).
        tile_o = 1024 if O >= 4096 else 256
    O_pad = _round_up(O, tile_o)
    if O_pad != O:
        wz_f = jnp.pad(wz_f, ((0, 0), (0, O_pad - O)))
        bz = jnp.pad(bz, (0, O_pad - O))

    def kernel(zp_ref, w_ref, b_ref, out_ref):
        out_ref[...] = jnp.dot(zp_ref[...], w_ref[...],
                               preferred_element_type=jnp.float32) + b_ref[...]

    # Only raise the scoped VMEM limit when the tiles actually need it.
    tile_bytes = 2 * K * tile_o * 2          # double-buffered bf16 weight tile
    vmem_limit = None
    if tile_bytes > 12 * 1024 * 1024:
        vmem_limit = min(3 * tile_bytes, 96 * 1024 * 1024)

    out = pl.pallas_call(
        kernel,
        out_shape=jax.ShapeDtypeStruct((M, O_pad), jnp.float32),
        grid=(O_pad // tile_o,),
        in_specs=[
            pl.BlockSpec((M, K), lambda o: (0, 0)),
            pl.BlockSpec((K, tile_o), lambda o: (0, o)),
            pl.BlockSpec((1, tile_o), lambda o: (0, o)),
        ],
        out_specs=pl.BlockSpec((M, tile_o), lambda o: (0, o)),
        compiler_params=pltpu.CompilerParams(
            dimension_semantics=("parallel",),
            vmem_limit_bytes=vmem_limit),
    )(z_patches.astype(jnp.bfloat16), wz_f.astype(jnp.bfloat16),
      bz.reshape(1, O_pad).astype(jnp.float32))
    return out[:, :O]


# ---------------- kernel 2: x branch + correlation + adjust bias --------------

def xbranch_corr(x_flat, wx_f, bx, fs, fr_adj, badj, *, W, Hm, OH):
    """Fused conv_cls2|conv_r2 + grouped cross-correlation + regress_adjust bias.

    x_flat: (N, Hx*W, C) spatially-flattened channel-minor instance features.
    wx_f:   (9C, 2C) fused conv weight (taps fused into K), bx: (2C,).
    fs:     (N, 2A, 9C) score filters, fr_adj: (N, 4A, 9C) reg filters with the
            regress_adjust 1x1 conv already folded in. badj: (4A,).
    Returns score (N, 2A, Lp), reg (N, 4A, Lp) with the flattened correlation
    positions padded to a 128-lane multiple (valid-column gather done by caller).
    """
    N, HW, C = x_flat.shape
    A2, A4 = fs.shape[1], fr_adj.shape[1]
    NC = 9 * C
    L1 = (Hm - 1) * W + Hm          # conv-stage flattened row count
    L2 = (OH - 1) * W + OH          # correlation-stage flattened row count
    Lp = _round_up(L2, 128)         # lane-dense output width
    dn = (((1,), (1,)), ((), ()))   # contract last dim of both operands

    def kernel(x_ref, wx_ref, bx_ref, fs_ref, fr_ref, badj_ref,
               score_ref, reg_ref):
        xf = x_ref[0]                                          # (Hx*W, C) bf16
        # ---- conv_cls2 | conv_r2: fused-K im2col, ONE (L1,9C)@(9C,2C) dot ----
        p1 = jnp.concatenate(
            [xf[kh * W + kw: kh * W + kw + L1, :]
             for kh in range(3) for kw in range(3)], axis=-1)  # (L1, 9C)
        act = jnp.dot(p1, wx_ref[...],
                      preferred_element_type=jnp.float32) + bx_ref[...]
        act_s = act[:, :C].astype(jnp.bfloat16)   # 128-aligned at prod C=512
        act_r = act[:, C:].astype(jnp.bfloat16)
        # ---- grouped cross-correlation: fused-K, one dot per head ----
        p2s = jnp.concatenate(
            [act_s[kh * W + kw: kh * W + kw + L2, :]
             for kh in range(3) for kw in range(3)], axis=-1)  # (L2, 9C)
        p2r = jnp.concatenate(
            [act_r[kh * W + kw: kh * W + kw + L2, :]
             for kh in range(3) for kw in range(3)], axis=-1)
        corr_s = jax.lax.dot_general(fs_ref[0], p2s, dn,
                                     preferred_element_type=jnp.float32)
        corr_r = jax.lax.dot_general(fr_ref[0], p2r, dn,
                                     preferred_element_type=jnp.float32)
        corr_r = corr_r + badj_ref[...]           # regress_adjust bias only
        # ---- lane-dense store (pad position axis to a 128 multiple) ----
        if Lp > L2:
            corr_s = jnp.concatenate(
                [corr_s, jnp.zeros((A2, Lp - L2), jnp.float32)], axis=-1)
            corr_r = jnp.concatenate(
                [corr_r, jnp.zeros((A4, Lp - L2), jnp.float32)], axis=-1)
        score_ref[0] = corr_s
        reg_ref[0] = corr_r

    return pl.pallas_call(
        kernel,
        out_shape=(jax.ShapeDtypeStruct((N, A2, Lp), jnp.float32),
                   jax.ShapeDtypeStruct((N, A4, Lp), jnp.float32)),
        grid=(N,),
        in_specs=[
            pl.BlockSpec((1, HW, C), lambda n: (n, 0, 0)),
            pl.BlockSpec((NC, 2 * C), lambda n: (0, 0)),
            pl.BlockSpec((1, 2 * C), lambda n: (0, 0)),
            pl.BlockSpec((1, A2, NC), lambda n: (n, 0, 0)),
            pl.BlockSpec((1, A4, NC), lambda n: (n, 0, 0)),
            pl.BlockSpec((A4, 1), lambda n: (0, 0)),
        ],
        out_specs=(pl.BlockSpec((1, A2, Lp), lambda n: (n, 0, 0)),
                   pl.BlockSpec((1, A4, Lp), lambda n: (n, 0, 0))),
        compiler_params=pltpu.CompilerParams(
            dimension_semantics=("parallel",)),
    )(x_flat.astype(jnp.bfloat16), wx_f.astype(jnp.bfloat16),
      bx.reshape(1, 2 * C).astype(jnp.float32),
      fs.astype(jnp.bfloat16), fr_adj.astype(jnp.bfloat16),
      badj.reshape(A4, 1).astype(jnp.float32))


# --------------------------------- forward ------------------------------------

def siamrpn_forward(z, x, params, anchor_num=5):
    """z: (N, C, 5, 5), x: (N, C, Hx, Hx) NCHW. Returns (pred_score, pred_reg)."""
    N, C, Hz, _ = z.shape
    Hx = x.shape[-1]
    A = anchor_num
    assert Hz == 5, "exemplar features must yield 3x3 correlation filters"
    W = Hx
    Hm = Hx - 2                      # instance conv output extent
    OH = Hm - 2                      # correlation output extent

    # single entry transpose; everything stays channel-minor afterwards
    z_nhwc = jnp.transpose(z, (0, 2, 3, 1))
    x_nhwc = jnp.transpose(x, (0, 2, 3, 1))

    # ---- weight repack (XLA glue; done once at load time in production) ----
    wz = jnp.concatenate([params["w_cls1"], params["w_r1"]], axis=0)   # (6AC,C,3,3)
    bz = jnp.concatenate([params["b_cls1"], params["b_r1"]], axis=0)
    wx = jnp.concatenate([params["w_cls2"], params["w_r2"]], axis=0)   # (2C,C,3,3)
    bx = jnp.concatenate([params["b_cls2"], params["b_r2"]], axis=0)
    O = wz.shape[0]                                                    # 6*A*C
    wz_f = jnp.transpose(wz, (2, 3, 1, 0)).reshape(9 * C, O)           # tap-major K
    wx_f = jnp.transpose(wx, (2, 3, 1, 0)).reshape(9 * C, 2 * C)

    # ---- kernel 1: z conv as a batch-flattened, O-tiled matmul ----
    # im2col of the 9 valid exemplar output positions (tiny; tap-major cols)
    zpat = jnp.stack(
        [z_nhwc[:, ph:ph + 3, pw:pw + 3, :].reshape(N, 9 * C)
         for ph in range(3) for pw in range(3)], axis=1)               # (N,9,9C)
    zo = zbranch_filters(zpat.reshape(N * 9, 9 * C), wz_f, bz)         # (N*9, O)
    zo = zo.reshape(N, 9, O)

    # repack to per-batch correlation filters (tap-major / channel-minor)
    fs = (zo[:, :, :2 * A * C].reshape(N, 9, 2 * A, C)
          .transpose(0, 2, 1, 3).reshape(N, 2 * A, 9 * C))
    fr = (zo[:, :, 2 * A * C:].reshape(N, 9, 4 * A, C)
          .transpose(0, 2, 1, 3).reshape(N, 4 * A, 9 * C))

    # fold regress_adjust's 1x1 conv into the regression filters (XLA glue)
    wadj = params["w_adj"].reshape(4 * A, 4 * A)
    fr_adj = jnp.einsum("ab,nbk->nak", wadj, fr)

    # ---- kernel 2: instance conv + grouped correlation + adjust bias ----
    x_flat = x_nhwc.reshape(N, Hx * W, C)
    score_p, reg_p = xbranch_corr(x_flat, wx_f, bx, fs, fr_adj,
                                  params["b_adj"], W=W, Hm=Hm, OH=OH)

    # valid-column gather (qx < OH) + NCHW layout, done cheaply in XLA
    pred_score = jnp.stack(
        [score_p[:, :, qy * W: qy * W + OH] for qy in range(OH)], axis=2)
    pred_regression = jnp.stack(
        [reg_p[:, :, qy * W: qy * W + OH] for qy in range(OH)], axis=2)
    return pred_score, pred_regression


# --------------------------- pure-JAX reference --------------------------------

def siamrpn_reference(z, x, params, anchor_num=5):
    A = anchor_num
    N, C = z.shape[:2]

    def conv(inp, w, b=None, groups=1):
        out = jax.lax.conv_general_dilated(
            inp, w, (1, 1), "VALID",
            dimension_numbers=("NCHW", "OIHW", "NCHW"),
            feature_group_count=groups)
        if b is not None:
            out = out + b.reshape(1, -1, 1, 1)
        return out

    ks = conv(z, params["w_cls1"], params["b_cls1"]).reshape(N, 2 * A, C, 3, 3)
    kr = conv(z, params["w_r1"], params["b_r1"]).reshape(N, 4 * A, C, 3, 3)
    cs = conv(x, params["w_cls2"], params["b_cls2"])
    cr = conv(x, params["w_r2"], params["b_r2"])
    Sp3 = cs.shape[-1]

    pred_score = conv(cs.reshape(1, -1, Sp3, Sp3), ks.reshape(-1, C, 3, 3),
                      groups=N).reshape(N, 2 * A, Sp3 - 2, Sp3 - 2)
    pred_reg = conv(cr.reshape(1, -1, Sp3, Sp3), kr.reshape(-1, C, 3, 3),
                    groups=N).reshape(N, 4 * A, Sp3 - 2, Sp3 - 2)
    pred_reg = conv(pred_reg, params["w_adj"], params["b_adj"])
    return pred_score, pred_reg


# ----------------------------------- main --------------------------------------

if __name__ == "__main__":
    N, C, A = 2, 32, 5            # batch, channels (scaled-down from 512), anchors
    Hz, Hx = 5, 8                 # exemplar / instance feature spatial sizes

    key = jax.random.PRNGKey(0)
    keys = jax.random.split(key, 12)
    s = 0.05
    params = {
        "w_cls1": s * jax.random.normal(keys[0], (2 * A * C, C, 3, 3), jnp.float32),
        "b_cls1": s * jax.random.normal(keys[1], (2 * A * C,), jnp.float32),
        "w_r1":   s * jax.random.normal(keys[2], (4 * A * C, C, 3, 3), jnp.float32),
        "b_r1":   s * jax.random.normal(keys[3], (4 * A * C,), jnp.float32),
        "w_cls2": s * jax.random.normal(keys[4], (C, C, 3, 3), jnp.float32),
        "b_cls2": s * jax.random.normal(keys[5], (C,), jnp.float32),
        "w_r2":   s * jax.random.normal(keys[6], (C, C, 3, 3), jnp.float32),
        "b_r2":   s * jax.random.normal(keys[7], (C,), jnp.float32),
        "w_adj":  s * jax.random.normal(keys[8], (4 * A, 4 * A, 1, 1), jnp.float32),
        "b_adj":  s * jax.random.normal(keys[9], (4 * A,), jnp.float32),
    }
    z = jax.random.normal(keys[10], (N, C, Hz, Hz), jnp.float32)
    x = jax.random.normal(keys[11], (N, C, Hx, Hx), jnp.float32)

    pred_score, pred_regression = siamrpn_forward(z, x, params, anchor_num=A)
    jax.block_until_ready((pred_score, pred_regression))

    ref_score, ref_reg = siamrpn_reference(z, x, params, anchor_num=A)
    assert pred_score.shape == (N, 2 * A, Hx - 4, Hx - 4), pred_score.shape
    assert pred_regression.shape == (N, 4 * A, Hx - 4, Hx - 4), pred_regression.shape
    # bf16 MXU operands with f32 accumulation -> looser tolerance than pure f32
    assert jnp.allclose(pred_score, ref_score, atol=2.5e-1, rtol=5e-2)
    assert jnp.allclose(pred_regression, ref_reg, atol=2.5e-1, rtol=5e-2)

    print("KERNEL_OK")
</pallas_src>

<mosaic_0001>
module attributes {stable_mosaic.version = 11 : i64} {
  func.func @kernel(%arg0: i32, %arg1: memref<18x288xbf16, #tpu.memory_space<vmem>>, %arg2: memref<288x256xbf16, #tpu.memory_space<vmem>>, %arg3: memref<1x256xf32, #tpu.memory_space<vmem>>, %arg4: memref<18x256xf32, #tpu.memory_space<vmem>>) attributes {dimension_semantics = [#tpu.dimension_semantics<parallel>], iteration_bounds = array<i64: 4>, scalar_prefetch = 0 : i64, scratch_operands = 0 : i64, tpu.core_type = #tpu.core_type<tc>, window_params = [{pipeline_mode = #tpu.pipeline_mode<synchronous>, transform_indices = @transform_0, window_bounds = array<i64: 18, 288>}, {transform_indices = @transform_1, window_bounds = array<i64: 288, 256>}, {transform_indices = @transform_2, window_bounds = array<i64: 1, 256>}, {transform_indices = @transform_3, window_bounds = array<i64: 18, 256>}]} {
    %c0 = arith.constant 0 : index
    %c0_0 = arith.constant 0 : index
    %0 = vector.load %arg1[%c0, %c0_0] : memref<18x288xbf16, #tpu.memory_space<vmem>>, vector<18x288xbf16>
    %c0_1 = arith.constant 0 : index
    %c0_2 = arith.constant 0 : index
    %1 = vector.load %arg2[%c0_1, %c0_2] : memref<288x256xbf16, #tpu.memory_space<vmem>>, vector<288x256xbf16>
    %cst = arith.constant dense<0.000000e+00> : vector<18x256xf32>
    %2 = tpu.matmul %0, %1, %cst {dimension_numbers = #tpu.dot_dimension_numbers<[1], [0], [0], [1], [0, 0, 1, 1], [], []>} : vector<18x288xbf16>, vector<288x256xbf16>, vector<18x256xf32> -> vector<18x256xf32>
    %c0_3 = arith.constant 0 : index
    %c0_4 = arith.constant 0 : index
    %3 = vector.load %arg3[%c0_3, %c0_4] : memref<1x256xf32, #tpu.memory_space<vmem>>, vector<1x256xf32>
    %4 = vector.broadcast %3 : vector<1x256xf32> to vector<18x256xf32>
    %5 = arith.addf %2, %4 : vector<18x256xf32>
    %c0_5 = arith.constant 0 : index
    %c0_6 = arith.constant 0 : index
    %6 = vector.load %arg4[%c0_5, %c0_6] : memref<18x256xf32, #tpu.memory_space<vmem>>, vector<18x256xf32>
    tpu.vector_store %arg4[%c0_5, %c0_6], %5 {strides = array<i32>} : memref<18x256xf32, #tpu.memory_space<vmem>>, vector<18x256xf32>,
    return
  }
  func.func @transform_0(%arg0: i32) -> (i32, i32) {
    %c0_i32 = arith.constant 0 : i32
    %c0_i32_0 = arith.constant 0 : i32
    %c0_i32_1 = arith.constant 0 : i32
    return %c0_i32, %c0_i32_0 : i32, i32
  }
  func.func @transform_1(%arg0: i32) -> (i32, i32) {
    %c0_i32 = arith.constant 0 : i32
    %c0_i32_0 = arith.constant 0 : i32
    return %c0_i32, %arg0 : i32, i32
  }
  func.func @transform_2(%arg0: i32) -> (i32, i32) {
    %c0_i32 = arith.constant 0 : i32
    %c0_i32_0 = arith.constant 0 : i32
    return %c0_i32, %arg0 : i32, i32
  }
  func.func @transform_3(%arg0: i32) -> (i32, i32) {
    %c0_i32 = arith.constant 0 : i32
    %c0_i32_0 = arith.constant 0 : i32
    return %c0_i32, %arg0 : i32, i32
  }
}

</mosaic_0001>

<bundles_post_ra>
// kernel: tpu_custom_call.1
= control target key start
LH: loop header
LB: loop body
LE: loop exit
PB: predicated region body
PF: predicated region fallthrough
CT: control target
= control target key end

     0   :  { %8 = vsyncpa [#allocation3], 0  ;;  %s1421_s0 = inlined_call_operand.hbm [shape: bf16[18,288], index: 0, kind: input, shape index: {}]   ;;  %s1422_s1 = inlined_call_operand.hbm [shape: bf16[288,1024], index: 1, kind: input, shape index: {}]   ;;  %s1423_s2 = inlined_call_operand.hbm [shape: f32[1,1024], index: 2, kind: input, shape index: {}]   ;;  %s1424_s3 = inlined_call_operand.hbm [shape: f32[18,1024], index: 3, kind: output, shape index: {}]  }
   0x1   :  { %9 = vsyncpa [#allocation6], 0 }
   0x2   :  { %11 = vsyncpa [#allocation6 + $0x1], 0 }
   0x3   :  { %12 = vsyncpa [#allocation4], 0 }
   0x4   :  { %14 = vsyncpa [#allocation4 + $0x1], 0  ;;  %s1139_s12 = smov 0   ;;  %s1141_s13 = smov 0  }
   0x5   :  { %s1143_s14 = smov 0   ;;  %s1145_s15 = smov 0  }
   0x6 LB: > { %s1160_s16 = sadd.s32 1, %s1104_s15   ;;  %s48_s17 = sadd.s32 1, %s1100_s14  ;;  %s1104_s15 = sphi %s1145_s15, %s1450_s15   ;;  %s1100_s14 = sphi %s1143_s14, %s1449_s14   ;;  %s1096_s13 = sphi %s1141_s13, %s1448_s13   ;;  %s1092_s12 = sphi %s1139_s12, %s1447_s12  }
   0x7   : > { %s45_s18 = ssub.s32 %s1104_s15, %s1160_s16  ;;  %p55_p0 = scmp.ne.s32.totalorder %s1100_s14, %s1096_s13 }
   0x8   : > { %p46_p1 = scmp.eq.s32.totalorder %s45_s18, 0  ;;  %p56_p2 = scmp.eq.s32.totalorder %s1104_s15, 0 }
   0x9   : > { %p840_p3 = scmp.lt.s32.totalorder %s1104_s15, 4  ;;  %s150_s20 = sand.u32 1, %s1104_s15  }
   0xa   : > { %s1170_s19 = scalar_select %p46_p1, %s1100_s14, %s48_s17  }
   0xb   : > { %p57_p4 = por %p56_p2, %p55_p0  ;;  %s152_s21 = sand.u32 1, %s1100_s14  }
   0xc   : > { %s811_s22 = smul.u32 288, %s152_s21  ;;  %s796_s23 = sshll.u32 %s1104_s15, 7 }
   0xd   : > { %s1183_s26 = scalar_lea.hbm %s1422_s1, %s796_s23  ;;  %p1185_p5 = pnand %p840_p3, %p57_p4 }
   0xe   : > { %s154_s28 = scalar_lea.vmem [#allocation5], %s811_s22  ;;  %s1191_s30 = scalar_lea.sflag [#allocation6], %s150_s20 }
   0xf   : > { %s1432_s27 = scalar_select %p1185_p5, 1, 0 }
  0x10   : > { %s161_s29 = sshll.u32 %s154_s28, 4  ;;  %s946_s4 = scalar_lea.hbm %s1183_s26, 4608  ;;  %s1189_s29 = int_to_ptr.vmem [resolvable:$true] %s161_s29 }
  0x11   : > { %p947_p6 = scmp.ne.s32.totalorder %s1183_s26, %s946_s4  ;;  %p1426_p7 = pneg %p1185_p5 }
  0x12   : > { %s951_s7 = scalar_lea.hbm %s1422_s1, 18432  ;;  %p952_p10 = scmp.lt.u32.totalorder %s1183_s26, %s1422_s1 }
  0x13   : > { %p949_p8 = pnand %p1426_p7, %p947_p6  ;;  %p953_p11 = scmp.lt.u32.totalorder %s951_s7, %s946_s4 }
  0x14   : > { %p955_p13 = scmp.lt.u32.totalorder %s946_s4, %s1183_s26 }
  0x15   : > { %p950_p9 = pneg %p949_p8  ;;  %p954_p12 = por %p953_p11, %p952_p10 }
  0x17   : > { %p956_p1 = por %p955_p13, %p954_p12 }
  0x19   : > { %p957_p2 = pnand %p956_p1, %p950_p9 }
  0x1b   : > { %960 = shalt.err (!%p957_p2)
}
  0x1c   : > { %s961_s10 = scalar_lea.vmem %s1189_s29, 4608  ;;  %s1106_s11 = smov [#allocation5]  }
  0x1d   : > { %p962_p3 = scmp.ne.s32.totalorder %s1189_s29, %s961_s10  ;;  %s966_s17 = sshll.u32 %s1106_s11, 4  ;;  %s967_s17 = int_to_ptr.vmem [resolvable:$false] %s966_s17 }
  0x1e   : > { %s968_s18 = scalar_lea.vmem %s967_s17, 9216  ;;  %p969_p8 = scmp.lt.s32.totalorder %s1189_s29, %s967_s17 }
  0x1f   : > { %p964_p4 = pnand %p962_p3, %p1426_p7  ;;  %p970_p10 = scmp.lt.s32.totalorder %s968_s18, %s961_s10 }
  0x21   : > { %p965_p6 = pneg %p964_p4  ;;  %p971_p11 = por %p970_p10, %p969_p8 }
  0x23   : > { %p972_p12 = pnand %p971_p11, %p965_p6 }
  0x25   : > { %975 = shalt.err (!%p972_p12)
}
  0x26   : > { %s1107_s20 = smov 512   ;;  %s1108_s22 = smov 128  }
  0x27   : > { %s1109_s23 = smov 8   ;;  %s1220_s24 = sadd.s32 4294967295, %s1104_s15  }
  0x28   : > { %831 = dma.hbm_to_vmem [thread:$0]  (!%p1185_p5), %s1183_s26, 4608, %s1189_s29, %s1191_s30, %s1107_s20, %s1108_s22, %s1109_s23  }
  0x29   : > { %s736_s25 = sadd.s32 4294967294, %s1104_s15   ;;  %p61_p9 = scmp.ne.s32.totalorder %s1096_s13, %s1092_s12 }
  0x2a   : > { %p1425_p13 = scmp.eq.s32.totalorder %s1220_s24, 0  ;;  %p111_p1 = scmp.eq.s32.totalorder %s1220_s24, 3 }
  0x2b   : > { %p117_p2 = scmp.eq.s32.totalorder %s736_s25, 3  ;;  %p737_p3 = scmp.ge.s32.totalorder %s1104_s15, 1 }
  0x2c   : > { %p1230_p4 = por %p1425_p13, %p61_p9  ;;  %p1237_p6 = por %p111_p1, %p55_p0 }
  0x2d   : > { %p1241_p8 = por %p117_p2, %p61_p9  ;;  %p124_p10 = scmp.lt.s32.totalorder %s1104_s15, 5 }
  0x2e   : > { %s1433_s28 = scalar_select %p1230_p4, 1, 0 }
  0x2f   : > { %s1434_s26 = scalar_select %p1237_p6, 1, 0 }
  0x30   : > { %s1435_s29 = scalar_select %p1241_p8, 1, 0 }
  0x31   : > { %p1246_p11 = pnand %p737_p3, %p124_p10  ;;  %s1110_s5 = smov [#allocation2]  }
  0x32   : > { %s136_s6 = sshll.u32 %s1110_s5, 4  ;;  %s742_s7 = sshll.u32 %s152_s21, 1  ;;  %s1250_s6 = int_to_ptr.vmem [resolvable:$true] %s136_s6 }
  0x33   : > { %s1436_s4 = scalar_select %p1246_p11, 1, 0 }
  0x34   : > { %p824_p12 = pneg %p1246_p11  ;;  %s797_s8 = sshll.u32 %s1104_s15, 5 }
  0x35   : > { %s1266_s17 = scalar_lea.hbm %s1423_s2, %s797_s8  ;;  %s175_s18 = scalar_lea.vmem [#allocation7], %s742_s7 }
  0x36   : > { %p1259_p0 = pnand %p824_p12, %p1425_p13  ;;  %s183_s20 = sshll.u32 %s175_s18, 4  ;;  %s1268_s20 = int_to_ptr.vmem [resolvable:$true] %s183_s20 }
  0x37   : > { %s976_s21 = scalar_lea.hbm %s1421_s0, 576 }
  0x38   : > { %p977_p9 = scmp.ne.s32.totalorder %s1421_s0, %s976_s21  ;;  %p978_p1 = pneg %p1259_p0 }
  0x39   : > { %p983_p10 = scmp.lt.u32.totalorder %s976_s21, %s1421_s0 }
  0x3a   : > { %p979_p2 = pnand %p978_p1, %p977_p9 }
  0x3c   : > { %p980_p3 = pneg %p979_p2 }
  0x3e   : > { %p985_p12 = pnand %p983_p10, %p980_p3 }
  0x40   : > { %988 = shalt.err (!%p985_p12)
}
  0x41   : > { %s989_s7 = scalar_lea.vmem %s1250_s6, 576  ;;  %p997_p6 = scmp.lt.s32.totalorder %s1250_s6, %s1250_s6 }
  0x42   : > { %p990_p13 = scmp.ne.s32.totalorder %s1250_s6, %s989_s7  ;;  %p998_p4 = scmp.lt.s32.totalorder %s989_s7, %s989_s7 }
  0x44   : > { %p992_p7 = pnand %p990_p13, %p978_p1  ;;  %p999_p11 = por %p998_p4, %p997_p6 }
  0x46   : > { %p993_p8 = pneg %p992_p7 }
  0x48   : > { %p1000_p5 = pnand %p999_p11, %p993_p8 }
  0x4a   : > { %1003 = shalt.err (!%p1000_p5)
}
  0x4b   : > { %s1111_s8 = smov 192   ;;  %s1112_s18 = smov 12  }
  0x4c   : > { %827 = dma.hbm_to_vmem [thread:$0]  (!%p1259_p0), %s1421_s0, 576, %s1250_s6, [#allocation3], %s1111_s8, %s1111_s8, %s1112_s18  }
  0x4d   : > { %s1004_s21 = scalar_lea.hbm %s1266_s17, 32  ;;  %p1438_p13 = scmp.ne.s32.totalorder %s1432_s27, 0 }
  0x4e   : > { %p1005_p7 = scmp.ne.s32.totalorder %s1266_s17, %s1004_s21  ;;  %s1009_s10 = scalar_lea.hbm %s1423_s2, 128 }
  0x4f   : > { %p1439_p4 = pneg %p1438_p13  ;;  %p1010_p8 = scmp.lt.u32.totalorder %s1266_s17, %s1423_s2 }
  0x50   : > { %p1011_p11 = scmp.lt.u32.totalorder %s1009_s10, %s1004_s21  ;;  %p1013_p1 = scmp.lt.u32.totalorder %s1004_s21, %s1266_s17 }
  0x51   : > { %p1007_p6 = pnand %p1005_p7, %p1439_p4 }
  0x52   : > { %p1012_p9 = por %p1011_p11, %p1010_p8 }
  0x53   : > { %p1008_p5 = pneg %p1007_p6 }
  0x54   : > { %p1014_p2 = por %p1013_p1, %p1012_p9 }
  0x56   : > { %p1015_p3 = pnand %p1014_p2, %p1008_p5 }
  0x58   : > { %1018 = shalt.err (!%p1015_p3)
}
  0x59   : > { %s1019_s6 = scalar_lea.vmem %s1268_s20, 32  ;;  %p1440_p10 = pmov %p1439_p4 }
  0x5a   : > { %p1020_p0 = scmp.ne.s32.totalorder %s1268_s20, %s1019_s6  ;;  %s1113_s9 = smov [#allocation7]  }
  0x5b   : > { %s1024_s8 = sshll.u32 %s1113_s9, 4  ;;  %s1025_s8 = int_to_ptr.vmem [resolvable:$false] %s1024_s8 }
  0x5c   : > { %p1022_p12 = pnand %p1020_p0, %p1440_p10  ;;  %s1026_s18 = scalar_lea.vmem %s1025_s8, 64 }
  0x5d   : > { %p1027_p4 = scmp.lt.s32.totalorder %s1268_s20, %s1025_s8  ;;  %p1028_p6 = scmp.lt.s32.totalorder %s1026_s18, %s1019_s6 }
  0x5e   : > { %p1023_p7 = pneg %p1022_p12 }
  0x5f   : > { %p1029_p8 = por %p1028_p6, %p1027_p4 }
  0x61   : > { %p1030_p11 = pnand %p1029_p8, %p1023_p7 }
  0x63   : > { %1033 = shalt.err (!%p1030_p11)
}
  0x64   : > { %834 = dma.hbm_to_vmem [thread:$0]  (!%p1438_p13), %s1266_s17, 32, %s1268_s20, %s1191_s30  }
  0x65   : > { %p1441_p5 = scmp.ne.s32.totalorder %s1436_s4, 0 }
  0x66   : > { %p1442_p9 = scmp.eq.s32.totalorder (!%p1441_p5), %s1220_s24, 0 }
  0x67   : > { %192 = sbr.rel (%p1441_p5) target bundleno = 422 (0x1a6), region = 32 }
  0x6e   : > { %1079 = dma.done.wait (%p1442_p9), [#allocation3], 576   ;;  %p1443_p1 = pmov %p1442_p9 }
  0x6f   : > { %s198_s22 = sand.u32 1, %s1220_s24   ;;  %s1323_s23 = sand.u32 1, %s1096_s13  }
  0x70   : > { %1081 = vsyncadd (%p1443_p1), [#allocation3], 4294966720  ;;  %s812_s27 = smul.u32 288, %s1323_s23  ;;  %s199_s21 = scalar_lea.sflag [#allocation6], %s198_s22 }
  0x71   : > { %p1444_p13 = scmp.ne.s32.totalorder %s1433_s28, 0 }
  0x72   : > { %s1326_s25 = scalar_lea.vmem [#allocation5], %s812_s27 }
  0x73   : > { %1083 = dma.done.wait (%p1444_p13), %s199_s21, 4640  }
  0x74   : > { %1085 = vsyncadd (%p1444_p13), %s199_s21, 4294962656  ;;  %v1114_v0 = vmov 0   ;;  %v885_v1 = vld [vmem:[%s1326_s25 + $0x4] ss:$8 sps:$4 sm:$0xff]   ;;  %v887_v2 = vld [vmem:[%s1326_s25] ss:$8 sps:$4 sm:$0xff]   ;;  %v287_v52 = vlaneseq }
  0x75   : > { %592 = vmatprep.mubr.bf16.mxu0 %v1114_v0  ;;  %509 = vmatprep.subr.bf16.mxu1 %v885_v1  ;;  %v888_v3 = vld [vmem:[%s1326_s25 + $0x14] ss:$8 sps:$4 sm:$0xff]   ;;  %v890_v4 = vld [vmem:[%s1326_s25 + $0x10] ss:$8 sps:$4 sm:$0xff]   ;;  %v891_v5 = vld [vmem:[%s1326_s25 + $0x24] ss:$8 sps:$4 sm:$0xff]  }
  0x76   : > { %510 = vmatpush1.bf16.msra.mxu1 %v887_v2  ;;  %v893_v6 = vld [vmem:[%s1326_s25 + $0x20] ss:$8 sps:$4 sm:$0xff]   ;;  %v894_v7 = vld [vmem:[%s1326_s25 + $0x34] ss:$8 sps:$4 sm:$0xff]   ;;  %v896_v8 = vld [vmem:[%s1326_s25 + $0x30] ss:$8 sps:$4 sm:$0xff]  }
  0x77   : > { %511 = vmatprep.subr.bf16.mxu1 %v888_v3  ;;  %v897_v9 = vld [vmem:[%s1326_s25 + $0x44] ss:$8 sps:$4 sm:$0xff]   ;;  %v899_v10 = vld [vmem:[%s1326_s25 + $0x40] ss:$8 sps:$4 sm:$0xff]   ;;  %v900_v11 = vld [vmem:[%s1326_s25 + $0x54] ss:$8 sps:$4 sm:$0xff]  }
  0x78   : > { %v902_v12 = vld [vmem:[%s1326_s25 + $0x50] ss:$8 sps:$4 sm:$0xff]   ;;  %v927_v13 = vld [vmem:[%s1326_s25 + $0x104] ss:$8 sps:$4 sm:$0xff]   ;;  %v931_v15 = vld [vmem:[%s1326_s25 + $0x100] ss:$8 sps:$4 sm:$0xff]  }
  0x79   : > { %v903_v14 = vld [vmem:[%s1326_s25 + $0x64] ss:$8 sps:$4 sm:$0xff]   ;;  %560 = vmatprep.subr.bf16.mxu0 %v927_v13  ;;  %v933_v16 = vld [vmem:[%s1326_s25 + $0x114] ss:$8 sps:$4 sm:$0xff]   ;;  %v905_v17 = vld [vmem:[%s1326_s25 + $0x60] ss:$8 sps:$4 sm:$0xff]  }
  0x7a   : > { %512 = vmatpush1.bf16.msra.mxu1 %v890_v4  ;;  %561 = vmatpush1.bf16.msra.mxu0 %v931_v15  ;;  %v937_v18 = vld [vmem:[%s1326_s25 + $0x110] ss:$8 sps:$4 sm:$0xff]   ;;  %v906_v19 = vld [vmem:[%s1326_s25 + $0x74] ss:$8 sps:$4 sm:$0xff]   ;;  %v941_v20 = vld [vmem:[#allocation2 + $0x4] ss:$12 sps:$4 sm:$0xff]  }
  0x7b   : > { %513 = vmatprep.subr.bf16.mxu1 %v891_v5  ;;  %562 = vmatprep.subr.bf16.mxu0 %v933_v16  ;;  %v942_v21 = vld [vmem:[#allocation2 + $0x8] ss:$12 sps:$4 sm:$0xff]   ;;  %vm502_vm0 = vcmask 261120   ;;  %v911_v24 = vld [vmem:[%s1326_s25 + $0x80] ss:$8 sps:$4 sm:$0xff]   ;;  %s747_s30 = sshll.u32 %s1323_s23, 1 }
  0x7c   : > { %v908_v22 = vld [vmem:[%s1326_s25 + $0x70] ss:$8 sps:$4 sm:$0xff]   ;;  %541 = vmatprep.mubr.bf16.mxu1 %v941_v20  ;;  %v909_v23 = vld [vmem:[%s1326_s25 + $0x84] ss:$8 sps:$4 sm:$0xff]   ;;  %v912_v25 = vld [vmem:[%s1326_s25 + $0x94] ss:$8 sps:$4 sm:$0xff]  }
  0x7d   : > { %v944_v26 = vld [vmem:[#allocation2 + $0x20] ss:$0 sps:$4 sm:$0x11]   ;;  %v914_v27 = vld [vmem:[%s1326_s25 + $0x90] ss:$8 sps:$4 sm:$0xff]   ;;  %v288_v53 = vshrl.u32 %v287_v52, 7 }
  0x7e   : > { %514 = vmatpush1.bf16.msra.mxu1 %v893_v6  ;;  %563 = vmatpush1.bf16.msra.mxu0 %v937_v18  ;;  %v915_v28 = vld [vmem:[%s1326_s25 + $0xa4] ss:$8 sps:$4 sm:$0xff]   ;;  %v917_v29 = vld [vmem:[%s1326_s25 + $0xa0] ss:$8 sps:$4 sm:$0xff]   ;;  %v918_v30 = vld [vmem:[%s1326_s25 + $0xb4] ss:$8 sps:$4 sm:$0xff]  }
  0x7f   : > { %515 = vmatprep.subr.bf16.mxu1 %v894_v7  ;;  %v920_v31 = vld [vmem:[%s1326_s25 + $0xb0] ss:$8 sps:$4 sm:$0xff]   ;;  %v921_v32 = vld [vmem:[%s1326_s25 + $0xc4] ss:$8 sps:$4 sm:$0xff]   ;;  %v923_v33 = vld [vmem:[%s1326_s25 + $0xc0] ss:$8 sps:$4 sm:$0xff]  }
  0x80   : > { %v924_v34 = vld [vmem:[%s1326_s25 + $0xd4] ss:$8 sps:$4 sm:$0xff]   ;;  %v926_v35 = vld [vmem:[%s1326_s25 + $0xd0] ss:$8 sps:$4 sm:$0xff]   ;;  %v929_v36 = vld [vmem:[%s1326_s25 + $0xe4] ss:$8 sps:$4 sm:$0xff]  }
  0x81   : > { %790 = vmatmul.mubr.msk.bf16.vlgmr.msra.gmra.mrb[0].mxu0 %vm502_vm0, %v942_v21  ;;  %v932_v37 = vld [vmem:[%s1326_s25 + $0xe0] ss:$8 sps:$4 sm:$0xff]   ;;  %v935_v38 = vld [vmem:[%s1326_s25 + $0xf4] ss:$8 sps:$4 sm:$0xff]   ;;  %v938_v39 = vld [vmem:[%s1326_s25 + $0xf0] ss:$8 sps:$4 sm:$0xff]  }
  0x82   : > { %516 = vmatpush1.bf16.msra.mxu1 %v896_v8  ;;  %602 = vmatprep.mubr.bf16.mxu0 %v1114_v0  ;;  %v247_v40 = vld [vmem:[#allocation2 + $0x18] sm:$0x11]  ;;  %v939_v41 = vld [vmem:[#allocation2] ss:$12 sps:$4 sm:$0xff]   ;;  %v289_v54 = vsub.s32 0, %v288_v53  ;;  %s211_s28 = scalar_lea.vmem [#allocation7], %s747_s30 }
  0x83   : > { %517 = vmatprep.subr.bf16.mxu1 %v897_v9  ;;  %v752_v42 = vcombine.high %v247_v40, %v247_v40  ;;  %v751_v43 = vcombine.low %v247_v40, %v247_v40  ;;  %v285_v55 = vld [vmem:[%s211_s28] sm:$0x3]  ;;  %v293_v56 = vsub.s32 1, %v288_v53  ;;  %s813_s4 = smul.u32 48, %s1323_s23  ;;  %s798_s5 = sshll.u32 %s1220_s24, 8 }
  0x84   : > { %v290_v57 = vrot.slane %v285_v55, %v289_v54  ;;  %s1378_s7 = scalar_lea.hbm %s1424_s3, %s798_s5  ;;  %s618_s24 = scalar_lea.sflag [#allocation4], %s1323_s23 }
  0x85   : > { %v294_v58 = vrot.slane %v285_v55, %v293_v56  ;;  %s238_s17 = scalar_lea.vmem [#allocation8], %s813_s4  ;;  %p1445_p3 = scmp.ne.s32.totalorder %s1434_s26, 0 }
  0x86   : > { %518 = vmatpush1.bf16.msra.mxu1 %v899_v10  ;;  %s631_s20 = sshll.u32 %s238_s17, 4  ;;  %s1115_s9 = smov [#allocation8]   ;;  %s1373_s20 = int_to_ptr.vmem [resolvable:$true] %s631_s20 }
  0x87   : > { %519 = vmatprep.subr.bf16.mxu1 %v900_v11  ;;  %s1034_s6 = scalar_lea.vmem %s1373_s20, 768  ;;  %s1038_s8 = sshll.u32 %s1115_s9, 4  ;;  %s1039_s8 = int_to_ptr.vmem [resolvable:$false] %s1038_s8 }
  0x88   : > { %p1035_p2 = scmp.ne.s32.totalorder %s1373_s20, %s1034_s6  ;;  %s1040_s18 = scalar_lea.vmem %s1039_s8, 1536 }
  0x89   : > { %791 = vmatmul.mubr.msk.bf16.gmra.mrb[4].mxu0 %vm502_vm0, %v944_v26  ;;  %p1041_p12 = scmp.lt.s32.totalorder %s1373_s20, %s1039_s8  ;;  %p1042_p7 = scmp.lt.s32.totalorder %s1040_s18, %s1034_s6 }
  0x8a   : > { %520 = vmatpush1.bf16.msra.mxu1 %v902_v12  ;;  %p1036_p0 = pnand %p1035_p2, %p1445_p3 }
  0x8b   : > { %521 = vmatprep.subr.bf16.mxu1 %v903_v14  ;;  %p1043_p4 = por %p1042_p7, %p1041_p12 }
  0x8c   : > { %p1037_p10 = pneg %p1036_p0 }
  0x8e   : > { %522 = vmatpush1.bf16.msra.mxu1 %v905_v17  ;;  %p1044_p6 = pnand %p1043_p4, %p1037_p10 }
  0x8f   : > { %523 = vmatprep.subr.bf16.mxu1 %v906_v19 }
  0x92   : > { %524 = vmatpush1.bf16.msra.mxu1 %v908_v22 }
  0x93   : > { %525 = vmatprep.subr.bf16.mxu1 %v909_v23 }
  0x96   : > { %526 = vmatpush1.bf16.msra.mxu1 %v911_v24 }
  0x97   : > { %527 = vmatprep.subr.bf16.mxu1 %v912_v25 }
  0x9a   : > { %528 = vmatpush1.bf16.msra.mxu1 %v914_v27 }
  0x9b   : > { %529 = vmatprep.subr.bf16.mxu1 %v915_v28 }
  0x9e   : > { %530 = vmatpush1.bf16.msra.mxu1 %v917_v29 }
  0x9f   : > { %531 = vmatprep.subr.bf16.mxu1 %v918_v30 }
  0xa2   : > { %532 = vmatpush1.bf16.msra.mxu1 %v920_v31 }
  0xa3   : > { %533 = vmatprep.subr.bf16.mxu1 %v921_v32 }
  0xa6   : > { %534 = vmatpush1.bf16.msra.mxu1 %v923_v33 }
  0xa7   : > { %535 = vmatprep.subr.bf16.mxu1 %v924_v34 }
  0xaa   : > { %536 = vmatpush1.bf16.msra.mxu1 %v926_v35 }
  0xab   : > { %537 = vmatprep.subr.bf16.mxu1 %v929_v36 }
  0xae   : > { %538 = vmatpush1.bf16.msra.mxu1 %v932_v37 }
  0xaf   : > { %539 = vmatprep.subr.bf16.mxu1 %v935_v38 }
  0xb2   : > { %540 = vmatpush1.bf16.msra.mxu1 %v938_v39 }
  0xb5   : > { %542 = vmatmul.mubr.bf16.vlgmr.msra.gmra.mrb[0].mxu1 %v939_v41 }
  0xb6   : > { %551 = vmatprep.mubr.bf16.mxu1 %v752_v42 }
  0xbd   : > { %552 = vmatmul.mubr.bf16.gmra.mrb[4].mxu1 %v751_v43 }
 0x154   : > { %v594_v44 = vpop.f32.mrb[0].mxu0 }
 0x155   : > { %v596_v45 = vpop.f32.mrb[1].mxu0 }
 0x156   : > { %v598_v46 = vpop.f32.mrb[2].mxu0 }
 0x157   : > { %v600_v47 = vpop.f32.mrb[3].mxu0 }
 0x15c   : > { %v604_v48 = vpop.f32.mrb[4].mxu0 }
 0x15d   : > { %v606_v49 = vpop.f32.mrb[5].mxu0 }
 0x15e   : > { %v608_v50 = vpop.f32.mrb[6].mxu0 }
 0x15f   : > { %v609_v51 = vpop.f32.mrb[7].mxu0 }
 0x188   : > { %v543_v59 = vpop.f32.mrb[0].mxu1 }
 0x189   : > { %v544_v60 = vadd.f32 %v543_v59, %v290_v57  ;;  %v545_v61 = vpop.f32.mrb[1].mxu1 }
 0x18a   : > { %v546_v62 = vadd.f32 %v545_v61, %v294_v58  ;;  %v547_v63 = vpop.f32.mrb[2].mxu1 }
 0x18b   : > { %v595_v0 = vadd.f32 %v594_v44, %v544_v60  ;;  %v548_v1 = vadd.f32 %v547_v63, %v290_v57  ;;  %v549_v2 = vpop.f32.mrb[3].mxu1 }
 0x18c   : > { %v597_v3 = vadd.f32 %v596_v45, %v546_v62  ;;  %v550_v4 = vadd.f32 %v549_v2, %v294_v58 }
 0x18d   : > { %611 = vst [vmem:[%s238_s17] sm:$0xff] %v595_v0  ;;  %v599_v5 = vadd.f32 %v598_v46, %v548_v1 }
 0x18e   : > { %612 = vst [vmem:[%s238_s17 + $0x8] sm:$0xff] %v597_v3  ;;  %v601_v6 = vadd.f32 %v600_v47, %v550_v4 }
 0x18f   : > { %613 = vst [vmem:[%s238_s17 + $0x10] sm:$0xff] %v599_v5 }
 0x190   : > { %614 = vst [vmem:[%s238_s17 + $0x18] sm:$0xff] %v601_v6  ;;  %v553_v7 = vpop.f32.mrb[4].mxu1 }
 0x191   : > { %v554_v8 = vadd.f32 %v553_v7, %v290_v57  ;;  %v555_v9 = vpop.f32.mrb[5].mxu1 }
 0x192   : > { %v556_v10 = vadd.f32 %v555_v9, %v294_v58  ;;  %v557_v11 = vpop.f32.mrb[6].mxu1 }
 0x193   : > { %v605_v12 = vadd.f32 %v604_v48, %v554_v8  ;;  %v558_v13 = vpop.f32.mrb[7].mxu1 }
 0x194   : > { %v607_v14 = vadd.f32 %v606_v49, %v556_v10 }
 0x195   : > { %615 = vst [vmem:[%s238_s17 + $0x20] sm:$0x3] %v605_v12 }
 0x196   : > { %616 = vst [vmem:[%s238_s17 + $0x28] sm:$0x3] %v607_v14 }
 0x197   : > { %1047 = shalt.err (!%p1044_p6)
}
 0x198   : > { %s1048_s22 = scalar_lea.hbm %s1378_s7, 768  ;;  %s1052_s25 = scalar_lea.hbm %s1424_s3, 3072 }
 0x199   : > { %p1049_p8 = scmp.ne.s32.totalorder %s1378_s7, %s1048_s22  ;;  %p1053_p9 = scmp.lt.u32.totalorder %s1378_s7, %s1424_s3 }
 0x19a   : > { %p1054_p1 = scmp.lt.u32.totalorder %s1052_s25, %s1048_s22  ;;  %p1056_p2 = scmp.lt.u32.totalorder %s1048_s22, %s1378_s7 }
 0x19b   : > { %p1050_p11 = pnand %p1049_p8, %p1445_p3 }
 0x19c   : > { %p1055_p13 = por %p1054_p1, %p1053_p9 }
 0x19d   : > { %p1051_p5 = pneg %p1050_p11 }
 0x19e   : > { %p1057_p0 = por %p1056_p2, %p1055_p13 }
 0x1a0   : > { %p1058_p10 = pnand %p1057_p0, %p1051_p5 }
 0x1a2   : > { %1061 = shalt.err (!%p1058_p10)
}
 0x1a3   : > { %s1116_s4 = smov 256   ;;  %s1117_s17 = smov 1024  }
 0x1a4   : > { %s1118_s5 = smov 16  }
 0x1a5   : > { %822 = dma.vmem_to_hbm [thread:$0]  (%p1445_p3), %s1373_s20, 768, %s1378_s7, %s618_s24, %s1116_s4, %s1117_s17, %s1118_s5  }
 0x1a6 PF: > { %p842_p12 = scmp.ge.s32.totalorder %s1104_s15, 2  ;;  %s646_s10 = sand.u32 1, %s1092_s12  }
 0x1a7   : > { %p1446_p7 = scmp.ne.s32.totalorder %s1435_s29, 0  ;;  %s647_s11 = scalar_lea.sflag [#allocation4], %s646_s10 }
 0x1a9   : > { %p836_p4 = pnand %p842_p12, %p1446_p7 }
 0x1ab   : > { %1087 = dma.done.wait (!%p836_p4), %s647_s11, 768  }
 0x1ac   : > { %1089 = vsyncadd (!%p836_p4), %s647_s11, 4294966528  ;;  %p17_p6 = scmp.ge.s32.totalorder %s1160_s16, 6   ;;  %s1447_s12 = smov %s1096_s13 }
 0x1ad   : > { %s1448_s13 = smov %s1100_s14  ;;  %s1449_s14 = smov %s1170_s19 }
 0x1ae   : > { %s1450_s15 = smov %s1160_s16  ;;  %19 = sbr.rel (!%p17_p6) target bundleno = 6 (0x6), region = 93 }
 0x1b5   :  { %652 = vsyncpa [#allocation3], 1 }
 0x1b6   :  { %654 = vsyncpa [#allocation3 + $0x1], 1 }
 0x1b7   :  { %655 = vsyncpa [#allocation6], 1 }
 0x1b8   :  { %657 = vsyncpa [#allocation6 + $0x1], 1 }
 0x1b9   :  { %658 = vsyncpa [#allocation4], 1 }
 0x1ba   :  { %660 = vsyncpa [#allocation4 + $0x1], 1 }

</bundles_post_ra>
